<compile_context>
chip_gen: v6e
topology: v6e:2x2x1
jax: 0.10.0
libtpu: 0.0.40
codegen_flags: <defaults>
</compile_context>

<pallas_src>
import functools

import jax
import jax.numpy as jnp
from jax import lax
from jax.experimental import pallas as pl
from jax.experimental.pallas import tpu as pltpu

_LANES = 128
_SUBLANES = 8


def _round_up(x, m):
    return -(-x // m) * m


def _tpu_defaults():
    """(num_cores, block_rows) tuned per TPU generation."""
    try:
        kind = jax.devices()[0].device_kind.lower()
    except Exception:
        kind = ""
    if "v5e" in kind or "v5 lite" in kind or "v5lite" in kind:
        return 1, 4096          # v5e: 1 TensorCore, ~820 GB/s HBM
    if "v6" in kind:
        return 1, 8192          # v6e: 1 TensorCore, ~1.35 TB/s HBM
    # v7x (2 TCs/chip) and megacore parts (v4/v5p); also a safe default otherwise.
    return 2, 8192


def _bce_dice_kernel(pr_ref, gt_ref, acc_ref, *, block_rows, sub_rows,
                     inner_blocks, total_blocks, last_valid, mask_from_block,
                     has_ragged):
    c = pl.program_id(0)            # TensorCore-parallel axis
    i = pl.program_id(1)            # streaming / reduction axis
    b_raw = c * inner_blocks + i    # logical (un-clamped) block index

    @pl.when(i == 0)
    def _init():
        acc_ref[...] = jnp.zeros_like(acc_ref)

    n_sub = block_rows // sub_rows

    def fold(a):
        # (sub_rows, 128) -> (8, 128) via pure VPU vreg adds (no cross-lane XLU).
        return a.reshape(sub_rows // _SUBLANES, _SUBLANES, _LANES).sum(axis=0)

    def make_body(masked):
        if masked:
            # Only the last real block (valid = last_valid, a static Python int)
            # and fully-out-of-range blocks (valid = 0) ever take this path, so no
            # global element index (int32-overflow risk for huge tensors) is formed.
            valid_in_tile = jnp.where(b_raw == total_blocks - 1,
                                      jnp.int32(last_valid), jnp.int32(0))

        def body(j, carry):
            r0 = j * sub_rows
            if not isinstance(r0, int):
                r0 = pl.multiple_of(r0, sub_rows)
            x = pr_ref[pl.ds(r0, sub_rows), :].astype(jnp.float32)   # logits
            y = gt_ref[pl.ds(r0, sub_rows), :].astype(jnp.float32)   # targets

            # sigmoid via tanh (one accurate EUP op, no divide / Newton refine):
            #   sigmoid(x)   = 0.5 * tanh(x/2) + 0.5
            #   sigmoid(|x|) = 0.5 * |tanh(x/2)| + 0.5
            t = jnp.tanh(x * 0.5)
            p = 0.5 * t + 0.5
            p_abs = 0.5 * jnp.abs(t) + 0.5
            # BCEWithLogits: max(x,0) - x*y + log1p(exp(-|x|))
            #              = max(x,0) - x*y - log(sigmoid(|x|))
            bce = jnp.maximum(x, 0.0) - x * y - jnp.log(p_abs)
            tp = y * p

            if masked:
                ridx = lax.broadcasted_iota(jnp.int32, (sub_rows, _LANES), 0)
                lidx = lax.broadcasted_iota(jnp.int32, (sub_rows, _LANES), 1)
                rel = j * (sub_rows * _LANES) + ridx * _LANES + lidx
                valid = rel < valid_in_tile
                # Ragged-edge / out-of-range contents are garbage (possibly
                # NaN/Inf): jnp.where, not multiply, so they cannot poison sums.
                tp = jnp.where(valid, tp, 0.0)
                p = jnp.where(valid, p, 0.0)
                y = jnp.where(valid, y, 0.0)
                bce = jnp.where(valid, bce, 0.0)

            acc_ref[0] += fold(tp)    # sum(gt * sigmoid(pr))
            acc_ref[1] += fold(p)     # sum(sigmoid(pr))
            acc_ref[2] += fold(y)     # sum(gt)
            acc_ref[3] += fold(bce)   # sum(elementwise BCE-with-logits)
            return carry

        return body

    def process(masked):
        body = make_body(masked)
        if n_sub == 1:
            body(0, 0)
        else:
            # fori_loop bounds live ranges: temporaries stay at sub_rows x 128.
            lax.fori_loop(0, n_sub, body, 0)

    if has_ragged:
        needs_mask = b_raw >= mask_from_block

        @pl.when(needs_mask)
        def _masked():
            process(True)

        @pl.when(jnp.logical_not(needs_mask))
        def _full():
            process(False)
    else:
        process(False)


def bce_dice_loss(y_pr, y_gt, *, eps=1e-07, lambda_dice=1.0, lambda_bce=1.0,
                  block_rows=None, num_cores=None):
    """Pallas TPU implementation of BCEDiceLoss.forward (activation='sigmoid')."""
    assert y_pr.shape == y_gt.shape
    total = int(y_pr.size)
    assert total > 0

    auto_cores, auto_rows = _tpu_defaults()
    num_cores = auto_cores if num_cores is None else int(num_cores)
    block_rows = auto_rows if block_rows is None else int(block_rows)

    rows = -(-total // _LANES)                       # ceil(total / 128)

    # Tile rows per grid step (big tiles amortize the ~0.35us/step pipeline cost).
    br = min(block_rows, -(-rows // num_cores))
    br = max(_SUBLANES, _round_up(br, _SUBLANES))
    sub_rows = 512
    if br > sub_rows:
        br = _round_up(br, sub_rows)
    else:
        sub_rows = br

    # Never pad rows up to a grid multiple (the old full-tensor-copy jnp.pad).
    # Only pad for the sub-128 remainder, or for tiny inputs whose row count is
    # smaller than one block (negligible data in both cases).
    rows_arr = max(rows, br)
    pad = rows_arr * _LANES - total                  # 0 for aligned, non-tiny inputs

    def prep(a):
        flat = a.reshape(-1)                         # free; no dtype copy (kernel casts)
        if pad:
            flat = jnp.pad(flat, (0, pad))
        return flat.reshape(rows_arr, _LANES)

    total_blocks = -(-rows_arr // br)
    inner_blocks = -(-total_blocks // num_cores)
    tile_elems = br * _LANES
    last_valid = total - (total_blocks - 1) * tile_elems      # in (0, tile_elems]
    mask_from_block = total_blocks - 1 if last_valid < tile_elems else total_blocks
    num_grid_blocks = num_cores * inner_blocks
    has_ragged = mask_from_block < num_grid_blocks

    kernel = functools.partial(
        _bce_dice_kernel,
        block_rows=br, sub_rows=sub_rows,
        inner_blocks=inner_blocks, total_blocks=total_blocks,
        last_valid=last_valid, mask_from_block=mask_from_block,
        has_ragged=has_ragged)

    # Clamp overflow / edge block indices so DMAs never start out of bounds; the
    # kernel masks any re-read data to zero.
    def in_map(c, i):
        return (jnp.minimum(c * inner_blocks + i, total_blocks - 1), 0)

    bytes_in = total * (y_pr.dtype.itemsize + y_gt.dtype.itemsize)
    cost = pl.CostEstimate(
        flops=14 * total,
        transcendentals=2 * total,
        bytes_accessed=bytes_in + num_cores * 4 * _SUBLANES * _LANES * 4,
    )
    # 2 inputs x 2 pipeline buffers of (br,128) f32, plus headroom for sub-chunk
    # temporaries and accumulators; stays within v7x's 64 MiB physical VMEM.
    vmem_limit = int(min(96 * 2 ** 20,
                         max(32 * 2 ** 20, 4 * br * _LANES * 4 + 16 * 2 ** 20)))

    partials = pl.pallas_call(
        kernel,
        out_shape=jax.ShapeDtypeStruct((num_cores * 4, _SUBLANES, _LANES),
                                       jnp.float32),
        grid_spec=pltpu.PrefetchScalarGridSpec(
            num_scalar_prefetch=0,
            grid=(num_cores, inner_blocks),
            in_specs=[pl.BlockSpec((br, _LANES), in_map),
                      pl.BlockSpec((br, _LANES), in_map)],
            out_specs=pl.BlockSpec((4, _SUBLANES, _LANES), lambda c, i: (c, 0, 0)),
        ),
        compiler_params=pltpu.CompilerParams(
            # "parallel" on the leading axis shards across TensorCores on
            # megacore / v7x parts; on single-TC chips num_cores defaults to 1.
            dimension_semantics=("parallel", "arbitrary"),
            vmem_limit_bytes=vmem_limit,
        ),
        cost_estimate=cost,
    )(prep(y_pr), prep(y_gt))

    # Tiny final cross-lane / cross-core reduction + scalar combine in plain JAX.
    sums = partials.reshape(num_cores, 4, _SUBLANES, _LANES).sum(axis=(0, 2, 3))
    tp, spr, sgt, sbce = sums[0], sums[1], sums[2], sums[3]
    # beta = 1: ((1+b^2)tp + eps) / ((1+b^2)tp + b^2 fn + fp + eps)
    #         = (2 tp + eps) / (sum(pr) + sum(gt) + eps)
    score = (2.0 * tp + eps) / (spr + sgt + eps)
    dice = 1.0 - score
    bce = sbce / jnp.float32(total)
    return lambda_dice * dice + lambda_bce * bce


def _bce_dice_ref(y_pr, y_gt, eps=1e-07, lambda_dice=1.0, lambda_bce=1.0):
    """Pure-JAX reference mirroring the PyTorch module."""
    x = y_pr.astype(jnp.float32)
    y = y_gt.astype(jnp.float32)
    p = jax.nn.sigmoid(x)
    tp = jnp.sum(y * p)
    fp = jnp.sum(p) - tp
    fn = jnp.sum(y) - tp
    score = (2.0 * tp + eps) / (2.0 * tp + fn + fp + eps)
    dice = 1.0 - score
    bce = jnp.mean(jnp.maximum(x, 0.0) - x * y + jnp.log1p(jnp.exp(-jnp.abs(x))))
    return lambda_dice * dice + lambda_bce * bce


if __name__ == "__main__":
    key = jax.random.PRNGKey(0)
    k1, k2, k3, k4, k5, k6 = jax.random.split(key, 6)

    # NCHW logits + binary masks (lane-aligned total: 2*4*16*16 = 16*128).
    y_pr = jax.random.normal(k1, (2, 4, 16, 16), dtype=jnp.float32) * 2.0
    y_gt = (jax.random.uniform(k2, (2, 4, 16, 16)) > 0.5).astype(jnp.float32)
    loss = jax.block_until_ready(bce_dice_loss(y_pr, y_gt))
    ref = _bce_dice_ref(y_pr, y_gt)
    assert jnp.allclose(loss, ref, atol=1e-5, rtol=1e-4), (loss, ref)

    # Ragged total (231 elements): exercises the sub-128 remainder + in-kernel mask.
    y_pr2 = jax.random.normal(k3, (3, 1, 7, 11), dtype=jnp.float32) * 2.0
    y_gt2 = (jax.random.uniform(k4, (3, 1, 7, 11)) > 0.5).astype(jnp.float32)
    loss2 = jax.block_until_ready(bce_dice_loss(y_pr2, y_gt2))
    ref2 = _bce_dice_ref(y_pr2, y_gt2)
    assert jnp.allclose(loss2, ref2, atol=1e-5, rtol=1e-4), (loss2, ref2)

    # bf16 inputs + forced small block_rows: multi-block grid with a ragged last
    # (edge) block and the in-kernel sub-chunk fori_loop, no wrapper-side pad.
    y_pr3 = (jax.random.normal(k5, (4, 4, 96, 128)) * 2.0).astype(jnp.bfloat16)
    y_gt3 = (jax.random.uniform(k6, (4, 4, 96, 128)) > 0.5).astype(jnp.bfloat16)
    loss3 = jax.block_until_ready(bce_dice_loss(y_pr3, y_gt3, block_rows=1024))
    ref3 = _bce_dice_ref(y_pr3, y_gt3)
    assert jnp.allclose(loss3, ref3, atol=5e-4, rtol=5e-4), (loss3, ref3)

    print("KERNEL_OK")
</pallas_src>

<mosaic_0001>
module attributes {stable_mosaic.version = 11 : i64} {
  func.func @_bce_dice_kernel(%arg0: i32, %arg1: i32, %arg2: memref<8x128xf32, #tpu.memory_space<vmem>>, %arg3: memref<8x128xf32, #tpu.memory_space<vmem>>, %arg4: memref<4x8x128xf32, #tpu.memory_space<vmem>>) attributes {dimension_semantics = [#tpu.dimension_semantics<parallel>, #tpu.dimension_semantics<arbitrary>], iteration_bounds = array<i64: 2, 1>, scalar_prefetch = 0 : i64, scratch_operands = 0 : i64, tpu.core_type = #tpu.core_type<tc>, window_params = [{transform_indices = @transform_0, window_bounds = array<i64: 8, 128>}, {transform_indices = @transform_1, window_bounds = array<i64: 8, 128>}, {transform_indices = @transform_2, window_bounds = array<i64: 4, 8, 128>}]} {
    %c0_i32 = arith.constant 0 : i32
    %0 = arith.cmpi eq, %arg1, %c0_i32 : i32
    %1 = arith.extui %0 : i1 to i32
    %c0_i32_0 = arith.constant 0 : i32
    %2 = arith.cmpi ne, %1, %c0_i32_0 : i32
    scf.if %2 {
      %cst_34 = arith.constant 0.000000e+00 : f32
      %56 = vector.broadcast %cst_34 : f32 to vector<4x8x128xf32>
      %c0_35 = arith.constant 0 : index
      %c0_36 = arith.constant 0 : index
      %c0_37 = arith.constant 0 : index
      %57 = vector.load %arg4[%c0_35, %c0_36, %c0_37] : memref<4x8x128xf32, #tpu.memory_space<vmem>>, vector<4x8x128xf32>
      tpu.vector_store %arg4[%c0_35, %c0_36, %c0_37], %56 {strides = array<i32>} : memref<4x8x128xf32, #tpu.memory_space<vmem>>, vector<4x8x128xf32>,
    } else {
    }
    %c0 = arith.constant 0 : index
    %c0_1 = arith.constant 0 : index
    %3 = vector.load %arg2[%c0, %c0_1] : memref<8x128xf32, #tpu.memory_space<vmem>>, vector<8x128xf32>
    %c0_2 = arith.constant 0 : index
    %c0_3 = arith.constant 0 : index
    %4 = vector.load %arg3[%c0_2, %c0_3] : memref<8x128xf32, #tpu.memory_space<vmem>>, vector<8x128xf32>
    %cst = arith.constant 5.000000e-01 : f32
    %5 = vector.broadcast %cst : f32 to vector<8x128xf32>
    %6 = arith.mulf %3, %5 : vector<8x128xf32>
    %7 = math.tanh %6 : vector<8x128xf32>
    %cst_4 = arith.constant 5.000000e-01 : f32
    %8 = vector.broadcast %cst_4 : f32 to vector<8x128xf32>
    %9 = arith.mulf %8, %7 : vector<8x128xf32>
    %cst_5 = arith.constant 5.000000e-01 : f32
    %10 = vector.broadcast %cst_5 : f32 to vector<8x128xf32>
    %11 = arith.addf %9, %10 : vector<8x128xf32>
    %12 = math.absf %7 : vector<8x128xf32>
    %cst_6 = arith.constant 5.000000e-01 : f32
    %13 = vector.broadcast %cst_6 : f32 to vector<8x128xf32>
    %14 = arith.mulf %13, %12 : vector<8x128xf32>
    %cst_7 = arith.constant 5.000000e-01 : f32
    %15 = vector.broadcast %cst_7 : f32 to vector<8x128xf32>
    %16 = arith.addf %14, %15 : vector<8x128xf32>
    %cst_8 = arith.constant 0.000000e+00 : f32
    %17 = vector.broadcast %cst_8 : f32 to vector<8x128xf32>
    %18 = arith.maximumf %3, %17 : vector<8x128xf32>
    %19 = arith.mulf %3, %4 : vector<8x128xf32>
    %20 = arith.subf %18, %19 : vector<8x128xf32>
    %21 = math.log %16 : vector<8x128xf32>
    %22 = arith.subf %20, %21 : vector<8x128xf32>
    %23 = arith.mulf %4, %11 : vector<8x128xf32>
    %c0_9 = arith.constant 0 : index
    %c0_10 = arith.constant 0 : index
    %c0_11 = arith.constant 0 : index
    %24 = vector.load %arg4[%c0_9, %c0_10, %c0_11] : memref<4x8x128xf32, #tpu.memory_space<vmem>>, vector<1x8x128xf32>
    %25 = vector.shape_cast %24 : vector<1x8x128xf32> to vector<8x128xf32>
    %26 = vector.shape_cast %23 : vector<8x128xf32> to vector<1x8x128xf32>
    %cst_12 = arith.constant dense<0.000000e+00> : vector<8x128xf32>
    %27 = vector.multi_reduction <add>, %26, %cst_12 [0] : vector<1x8x128xf32> to vector<8x128xf32>
    %28 = arith.addf %25, %27 : vector<8x128xf32>
    %c0_13 = arith.constant 0 : index
    %c0_14 = arith.constant 0 : index
    %c0_15 = arith.constant 0 : index
    %29 = vector.load %arg4[%c0_13, %c0_14, %c0_15] : memref<4x8x128xf32, #tpu.memory_space<vmem>>, vector<1x8x128xf32>
    %30 = vector.shape_cast %29 : vector<1x8x128xf32> to vector<8x128xf32>
    %31 = vector.shape_cast %28 : vector<8x128xf32> to vector<1x8x128xf32>
    tpu.vector_store %arg4[%c0_13, %c0_14, %c0_15], %31 {strides = array<i32>} : memref<4x8x128xf32, #tpu.memory_space<vmem>>, vector<1x8x128xf32>,
    %c1 = arith.constant 1 : index
    %c0_16 = arith.constant 0 : index
    %c0_17 = arith.constant 0 : index
    %32 = vector.load %arg4[%c1, %c0_16, %c0_17] : memref<4x8x128xf32, #tpu.memory_space<vmem>>, vector<1x8x128xf32>
    %33 = vector.shape_cast %32 : vector<1x8x128xf32> to vector<8x128xf32>
    %34 = vector.shape_cast %11 : vector<8x128xf32> to vector<1x8x128xf32>
    %cst_18 = arith.constant dense<0.000000e+00> : vector<8x128xf32>
    %35 = vector.multi_reduction <add>, %34, %cst_18 [0] : vector<1x8x128xf32> to vector<8x128xf32>
    %36 = arith.addf %33, %35 : vector<8x128xf32>
    %c1_19 = arith.constant 1 : index
    %c0_20 = arith.constant 0 : index
    %c0_21 = arith.constant 0 : index
    %37 = vector.load %arg4[%c1_19, %c0_20, %c0_21] : memref<4x8x128xf32, #tpu.memory_space<vmem>>, vector<1x8x128xf32>
    %38 = vector.shape_cast %37 : vector<1x8x128xf32> to vector<8x128xf32>
    %39 = vector.shape_cast %36 : vector<8x128xf32> to vector<1x8x128xf32>
    tpu.vector_store %arg4[%c1_19, %c0_20, %c0_21], %39 {strides = array<i32>} : memref<4x8x128xf32, #tpu.memory_space<vmem>>, vector<1x8x128xf32>,
    %c2 = arith.constant 2 : index
    %c0_22 = arith.constant 0 : index
    %c0_23 = arith.constant 0 : index
    %40 = vector.load %arg4[%c2, %c0_22, %c0_23] : memref<4x8x128xf32, #tpu.memory_space<vmem>>, vector<1x8x128xf32>
    %41 = vector.shape_cast %40 : vector<1x8x128xf32> to vector<8x128xf32>
    %42 = vector.shape_cast %4 : vector<8x128xf32> to vector<1x8x128xf32>
    %cst_24 = arith.constant dense<0.000000e+00> : vector<8x128xf32>
    %43 = vector.multi_reduction <add>, %42, %cst_24 [0] : vector<1x8x128xf32> to vector<8x128xf32>
    %44 = arith.addf %41, %43 : vector<8x128xf32>
    %c2_25 = arith.constant 2 : index
    %c0_26 = arith.constant 0 : index
    %c0_27 = arith.constant 0 : index
    %45 = vector.load %arg4[%c2_25, %c0_26, %c0_27] : memref<4x8x128xf32, #tpu.memory_space<vmem>>, vector<1x8x128xf32>
    %46 = vector.shape_cast %45 : vector<1x8x128xf32> to vector<8x128xf32>
    %47 = vector.shape_cast %44 : vector<8x128xf32> to vector<1x8x128xf32>
    tpu.vector_store %arg4[%c2_25, %c0_26, %c0_27], %47 {strides = array<i32>} : memref<4x8x128xf32, #tpu.memory_space<vmem>>, vector<1x8x128xf32>,
    %c3 = arith.constant 3 : index
    %c0_28 = arith.constant 0 : index
    %c0_29 = arith.constant 0 : index
    %48 = vector.load %arg4[%c3, %c0_28, %c0_29] : memref<4x8x128xf32, #tpu.memory_space<vmem>>, vector<1x8x128xf32>
    %49 = vector.shape_cast %48 : vector<1x8x128xf32> to vector<8x128xf32>
    %50 = vector.shape_cast %22 : vector<8x128xf32> to vector<1x8x128xf32>
    %cst_30 = arith.constant dense<0.000000e+00> : vector<8x128xf32>
    %51 = vector.multi_reduction <add>, %50, %cst_30 [0] : vector<1x8x128xf32> to vector<8x128xf32>
    %52 = arith.addf %49, %51 : vector<8x128xf32>
    %c3_31 = arith.constant 3 : index
    %c0_32 = arith.constant 0 : index
    %c0_33 = arith.constant 0 : index
    %53 = vector.load %arg4[%c3_31, %c0_32, %c0_33] : memref<4x8x128xf32, #tpu.memory_space<vmem>>, vector<1x8x128xf32>
    %54 = vector.shape_cast %53 : vector<1x8x128xf32> to vector<8x128xf32>
    %55 = vector.shape_cast %52 : vector<8x128xf32> to vector<1x8x128xf32>
    tpu.vector_store %arg4[%c3_31, %c0_32, %c0_33], %55 {strides = array<i32>} : memref<4x8x128xf32, #tpu.memory_space<vmem>>, vector<1x8x128xf32>,
    return
  }
  func.func @transform_0(%arg0: i32, %arg1: i32) -> (i32, i32) {
    %c1_i32 = arith.constant 1 : i32
    %0 = arith.muli %arg0, %c1_i32 : i32
    %1 = arith.addi %0, %arg1 : i32
    %c1_i32_0 = arith.constant 1 : i32
    %2 = arith.minsi %1, %c1_i32_0 : i32
    %c0_i32 = arith.constant 0 : i32
    %c0_i32_1 = arith.constant 0 : i32
    return %2, %c0_i32 : i32, i32
  }
  func.func @transform_1(%arg0: i32, %arg1: i32) -> (i32, i32) {
    %c1_i32 = arith.constant 1 : i32
    %0 = arith.muli %arg0, %c1_i32 : i32
    %1 = arith.addi %0, %arg1 : i32
    %c1_i32_0 = arith.constant 1 : i32
    %2 = arith.minsi %1, %c1_i32_0 : i32
    %c0_i32 = arith.constant 0 : i32
    %c0_i32_1 = arith.constant 0 : i32
    return %2, %c0_i32 : i32, i32
  }
  func.func @transform_2(%arg0: i32, %arg1: i32) -> (i32, i32, i32) {
    %c0_i32 = arith.constant 0 : i32
    %c0_i32_0 = arith.constant 0 : i32
    %c0_i32_1 = arith.constant 0 : i32
    return %arg0, %c0_i32, %c0_i32_0 : i32, i32, i32
  }
}

</mosaic_0001>

<bundles_post_ra>
// kernel: tpu_custom_call.1
= control target key start
LH: loop header
LB: loop body
LE: loop exit
PB: predicated region body
PF: predicated region fallthrough
CT: control target
= control target key end

     0   :  { %s909_s0 = inlined_call_operand.hbm [shape: f32[16,128], index: 0, kind: input, shape index: {}]   ;;  %s910_s1 = inlined_call_operand.hbm [shape: f32[16,128], index: 1, kind: input, shape index: {}]   ;;  %s911_s2 = inlined_call_operand.hbm [shape: f32[8,8,128], index: 2, kind: output, shape index: {}]  }
   0x1   :  { %912 = sst [smem:[#allocation11_spill]] %s909_s0 }
   0x2   :  { %7 = vsyncpa [#allocation3], 0 }
   0x3   :  { %9 = vsyncpa [#allocation3 + $0x1], 0 }
   0x4   :  { %10 = vsyncpa [#allocation6], 0 }
   0x5   :  { %12 = vsyncpa [#allocation6 + $0x1], 0 }
   0x6   :  { %13 = vsyncpa [#allocation4], 0 }
   0x7   :  { %15 = vsyncpa [#allocation4 + $0x1], 0  ;;  %s702_s9 = smov 0   ;;  %s704_s10 = smov 0  }
   0x8   :  { %s706_s11 = smov 0   ;;  %s708_s12 = smov 0  }
   0x9   :  { %s710_s13 = smov 0   ;;  %s712_s14 = smov 0  }
   0xa   :  { %s714_s15 = smov 0   ;;  %s716_s16 = smov 0  }
   0xb   :  { %s718_s17 = smov 0  }
   0xc LB: > { %s394_s18 = sadd.s32 4294967295, %s680_s17   ;;  %s395_s19 = sadd.s32 4294967294, %s680_s17   ;;  %s680_s17 = sphi %s718_s17, %s21_s17   ;;  %s676_s16 = sphi %s716_s16, %s928_s16   ;;  %s672_s15 = sphi %s714_s15, %s927_s15   ;;  %s668_s14 = sphi %s712_s14, %s926_s14   ;;  %s664_s13 = sphi %s710_s13, %s925_s13   ;;  %s660_s12 = sphi %s708_s12, %s924_s12   ;;  %s656_s11 = sphi %s706_s11, %s923_s11   ;;  %s652_s10 = sphi %s704_s10, %s922_s10   ;;  %s648_s9 = sphi %s702_s9, %s921_s9  }
   0xd   : > { %s33_s20 = sadd.s32 1, %s676_s16  ;;  %p38_p0 = scmp.lt.s32.totalorder %s676_s16, 1 }
   0xe   : > { %p35_p1 = scmp.ge.s32.totalorder %s33_s20, 2  ;;  %s46_s21 = sadd.s32 1, %s668_s14 }
   0xf   : > { %s751_s22 = scalar_select %p38_p0, %s676_s16, 1 }
  0x10   : > { %s930_s20 = smov (%p35_p1, %s33_s20), 0  ;;  %p53_p2 = scmp.ne.s32.totalorder %s668_s14, %s664_s13 }
  0x11   : > { %p54_p3 = scmp.eq.s32.totalorder %s680_s17, 0  ;;  %p41_p4 = scmp.lt.s32.totalorder %s930_s20, 1 }
  0x12   : > { %p59_p5 = scmp.ne.s32.totalorder %s664_s13, %s660_s12  ;;  %p60_p7 = scmp.eq.s32.totalorder %s394_s18, 0 }
  0x13   : > { %p760_p6 = por %p54_p3, %p53_p2  ;;  %s101_s26 = ssub.s32 %s676_s16, %s930_s20 }
  0x14   : > { %s42_s24 = scalar_select %p41_p4, %s930_s20, 1 }
  0x15   : > { %p765_p8 = por %p60_p7, %p59_p5  ;;  %p102_p9 = scmp.eq.s32.totalorder %s101_s26, 0 }
  0x16   : > { %s43_s27 = ssub.s32 %s751_s22, %s42_s24  ;;  %s104_s28 = sadd.s32 1, %s656_s11 }
  0x17   : > { %p44_p10 = scmp.eq.s32.totalorder %s43_s27, 0  ;;  %p114_p11 = scmp.ne.s32.totalorder %s656_s11, %s652_s10 }
  0x18   : > { %s774_s29 = scalar_select %p102_p9, %s656_s11, %s104_s28  }
  0x19   : > { %s777_s30 = scalar_select %p44_p10, %s668_s14, %s46_s21  }
  0x1a   : > { %p115_p12 = scmp.eq.s32.totalorder %s394_s18, 1  ;;  %p120_p13 = scmp.ne.s32.totalorder %s652_s10, %s648_s9 }
  0x1b   : > { %p121_p0 = scmp.eq.s32.totalorder %s395_s19, 1  ;;  %p435_p4 = scmp.lt.s32.totalorder %s680_s17, 2 }
  0x1c   : > { %p783_p1 = por %p115_p12, %p114_p11  ;;  %s794_s5 = sand.u32 1, %s668_s14  }
  0x1d   : > { %p788_p3 = por %p121_p0, %p120_p13  ;;  %s399_s6 = sshll.u32 %s751_s22, 7 }
  0x1e   : > { %s398_s7 = sshll.u32 %s794_s5, 3  ;;  %s917_s0 = sld [smem:[#allocation11_spill]] }
  0x1f   : > { %s145_s19 = scalar_lea.vmem [#allocation2], %s398_s7  ;;  %p803_p5 = pnand %p435_p4, %p760_p6 }
  0x20   : > { %s155_s21 = sshll.u32 %s145_s19, 4  ;;  %p402_p7 = scmp.ge.s32.totalorder %s680_s17, 1  ;;  %s156_s21 = int_to_ptr.vmem [resolvable:$true] %s155_s21 }
  0x21   : > { %p181_p9 = scmp.lt.s32.totalorder %s680_s17, 3  ;;  %s142_s26 = scalar_lea.sflag [#allocation3], %s794_s5 }
  0x22   : > { %p518_p10 = pneg %p803_p5  ;;  %s529_s22 = scalar_lea.vmem %s156_s21, 128 }
  0x23   : > { %p530_p11 = scmp.ne.s32.totalorder %s156_s21, %s529_s22  ;;  %s682_s27 = smov [#allocation2]  }
  0x24   : > { %s153_s18 = scalar_lea.hbm %s917_s0, %s399_s6  ;;  %s534_s23 = sshll.u32 %s682_s27, 4  ;;  %s535_s23 = int_to_ptr.vmem [resolvable:$false] %s534_s23 }
  0x25   : > { %p532_p12 = pnand %p530_p11, %p518_p10  ;;  %s536_s28 = scalar_lea.vmem %s535_s23, 256 }
  0x26   : > { %p537_p6 = scmp.lt.s32.totalorder %s156_s21, %s535_s23  ;;  %p538_p0 = scmp.lt.s32.totalorder %s536_s28, %s529_s22 }
  0x27   : > { %p533_p13 = pneg %p532_p12 }
  0x28   : > { %p539_p4 = por %p538_p0, %p537_p6 }
  0x2a   : > { %p540_p2 = pnand %p539_p4, %p533_p13 }
  0x2c   : > { %543 = shalt.err (!%p540_p2)
}
  0x2d   : > { %427 = dma.hbm_to_vmem [thread:$0]  (!%p803_p5), %s153_s18, 128, %s156_s21, %s142_s26  }
  0x2e   : > { %p821_p11 = pnand %p402_p7, %p181_p9  ;;  %s174_s22 = scalar_lea.hbm %s910_s1, %s399_s6 }
  0x2f   : > { %s166_s27 = scalar_lea.vmem [#allocation5], %s398_s7  ;;  %s163_s28 = scalar_lea.sflag [#allocation6], %s794_s5 }
  0x30   : > { %s176_s23 = sshll.u32 %s166_s27, 4  ;;  %s683_s18 = smov [#allocation5]   ;;  %s177_s23 = int_to_ptr.vmem [resolvable:$true] %s176_s23 }
  0x31   : > { %s557_s0 = scalar_lea.vmem %s177_s23, 128  ;;  %s562_s21 = sshll.u32 %s683_s18, 4  ;;  %s563_s21 = int_to_ptr.vmem [resolvable:$false] %s562_s21 }
  0x32   : > { %p558_p2 = scmp.ne.s32.totalorder %s177_s23, %s557_s0  ;;  %s564_s26 = scalar_lea.vmem %s563_s21, 256 }
  0x33   : > { %p565_p7 = scmp.lt.s32.totalorder %s177_s23, %s563_s21  ;;  %p566_p9 = scmp.lt.s32.totalorder %s564_s26, %s557_s0 }
  0x34   : > { %p560_p12 = pnand %p558_p2, %p518_p10 }
  0x35   : > { %p567_p6 = por %p566_p9, %p565_p7 }
  0x36   : > { %p561_p13 = pneg %p560_p12 }
  0x38   : > { %p568_p0 = pnand %p567_p6, %p561_p13 }
  0x3a   : > { %571 = shalt.err (!%p568_p0)
}
  0x3b   : > { %430 = dma.hbm_to_vmem [thread:$0]  (!%p803_p5), %s174_s22, 128, %s177_s23, %s163_s28  }
  0x3c   : > { %185 = sbr.rel (%p821_p11) target bundleno = 123 (0x7b), region = 28  ;;  %s187_s5 = sand.u32 (!%p821_p11), 1, %s664_s13  }
  0x3d   : > { %s403_s6 = sshll.u32 (!%p821_p11), %s187_s5, 3  ;;  %s188_s7 = scalar_lea.sflag (!%p821_p11), [#allocation3], %s187_s5 }
  0x3e   : > { %s191_s12 = scalar_lea.vmem (!%p821_p11), [#allocation2], %s403_s6 }
  0x41   : > { %635 = dma.done.wait (%p765_p8), %s188_s7, 128  }
  0x42   : > { %637 = vsyncadd (%p765_p8), %s188_s7, 4294967168  ;;  %s197_s0 = scalar_lea.sflag [#allocation6], %s187_s5  ;;  %s200_s19 = scalar_lea.vmem [#allocation5], %s403_s6 }
  0x43   : > { %639 = dma.done.wait (%p765_p8), %s197_s0, 128  }
  0x44   : > { %641 = vsyncadd (%p765_p8), %s197_s0, 4294967168  ;;  %s223_s24 = sand.u32 1, %s652_s10   ;;  %v241_v0 = vld [vmem:[%s191_s12] sm:$0xff]  ;;  %v242_v1 = vld [vmem:[%s200_s19] sm:$0xff]  ;;  %s417_s25 = sshll.u32 %s672_s15, 9 }
  0x45   : > { %s405_s8 = sshll.u32 %s223_s24, 5  ;;  %v243_v2 = vmul.f32 0.5, %v241_v0  ;;  %v250_v10 = vmax.f32 %v241_v0, 0.0  ;;  %v251_v11 = vmul.f32 %v242_v1, %v241_v0  ;;  %s850_s18 = scalar_lea.hbm %s911_s2, %s417_s25 }
  0x46   : > { %s225_s22 = scalar_lea.vmem [#allocation7], %s405_s8  ;;  %s854_s21 = scalar_lea.sflag [#allocation4], %s223_s24 }
  0x47   : > { %512 = vtanh.f32 %v243_v2  ;;  %409 = vst [vmem:[%s225_s22 + $0x10] sm:$0xff] %v242_v1  ;;  %v252_v12 = vsub.f32 %v250_v10, %v251_v11  ;;  %s290_s27 = sshll.u32 %s225_s22, 4  ;;  %s684_s15 = smov [#allocation7]   ;;  %s852_s27 = int_to_ptr.vmem [resolvable:$true] %s290_s27 }
  0x48   : > { %s572_s26 = scalar_lea.vmem %s852_s27, 512  ;;  %s576_s5 = sshll.u32 %s684_s15, 4  ;;  %s577_s5 = int_to_ptr.vmem [resolvable:$false] %s576_s5 }
  0x49   : > { %p573_p8 = scmp.ne.s32.totalorder %s852_s27, %s572_s26  ;;  %s578_s6 = scalar_lea.vmem %s577_s5, 1024 }
  0x4a   : > { %p579_p4 = scmp.lt.s32.totalorder %s852_s27, %s577_s5  ;;  %p580_p11 = scmp.lt.s32.totalorder %s578_s6, %s572_s26 }
  0x4b   : > { %p574_p5 = pnand %p573_p8, %p783_p1 }
  0x4c   : > { %p581_p2 = por %p580_p11, %p579_p4 }
  0x4d   : > { %p575_p10 = pneg %p574_p5 }
  0x4f   : > { %p582_p12 = pnand %p581_p2, %p575_p10 }
  0x54   : > { %v513_v3 = vpop.eup %512 }
  0x55   : > { %v245_v4 = vmul.f32 0.5, %v513_v3  ;;  %v247_v5 = vand.u32 2147483647, %v513_v3 }
  0x57   : > { %v246_v6 = vadd.f32 0.5, %v245_v4  ;;  %v248_v7 = vmul.f32 0.5, %v247_v5 }
  0x59   : > { %v256_v8 = vmul.f32 %v246_v6, %v242_v1  ;;  %v249_v9 = vadd.f32 0.5, %v248_v7  ;;  %407 = vst [vmem:[%s225_s22 + $0x8] sm:$0xff] %v246_v6 }
  0x5b   : > { %514 = vlog2.f32 %v249_v9  ;;  %260 = vst [vmem:[%s225_s22] sm:$0xff] %v256_v8 }
  0x68   : > { %v515_v13 = vpop.eup %514 }
  0x69   : > { %v254_v14 = vmul.f32 0.6931472, %v515_v13 }
  0x6b   : > { %v255_v15 = vsub.f32 %v252_v12, %v254_v14 }
  0x6d   : > { %411 = vst [vmem:[%s225_s22 + $0x18] sm:$0xff] %v255_v15 }
  0x6e   : > { %585 = shalt.err (!%p582_p12)
}
  0x6f   : > { %s586_s7 = scalar_lea.hbm %s850_s18, 512  ;;  %s590_s19 = scalar_lea.hbm %s911_s2, 1024 }
  0x70   : > { %p587_p13 = scmp.ne.s32.totalorder %s850_s18, %s586_s7  ;;  %p591_p6 = scmp.lt.s32.totalorder %s850_s18, %s911_s2 }
  0x71   : > { %p592_p0 = scmp.lt.s32.totalorder %s590_s19, %s586_s7 }
  0x72   : > { %p588_p7 = pnand %p587_p13, %p783_p1 }
  0x73   : > { %p593_p8 = por %p592_p0, %p591_p6 }
  0x74   : > { %p589_p9 = pneg %p588_p7 }
  0x76   : > { %p594_p5 = pnand %p593_p8, %p589_p9 }
  0x78   : > { %597 = shalt.err (!%p594_p5)
}
  0x79   : > { %s685_s22 = smov 128   ;;  %s686_s25 = smov 8  }
  0x7a   : > { %422 = dma.vmem_to_hbm [thread:$0]  (%p783_p1), %s852_s27, 512, %s850_s18, %s854_s21, %s685_s22, %s685_s22, %s686_s25  }
  0x7b PF: > { %s305_s23 = sand.u32 1, %s648_s9   ;;  %p920_p10 = scmp.ge.s32.totalorder %s680_s17, 2 }
  0x7c   : > { %s306_s28 = scalar_lea.sflag [#allocation4], %s305_s23 }
  0x7d   : > { %p432_p4 = pnand %p920_p10, %p788_p3 }
  0x7f   : > { %p433_p11 = pneg %p432_p4 }
  0x81   : > { %643 = dma.done.wait (%p433_p11), %s306_s28, 512  }
  0x82   : > { %645 = vsyncadd (%p433_p11), %s306_s28, 4294966784  ;;  %s21_s17 = sadd.s32 1, %s680_s17   ;;  %s921_s9 = smov %s652_s10 }
  0x83   : > { %p18_p2 = scmp.ge.s32.totalorder %s21_s17, 4   ;;  %s922_s10 = smov %s656_s11 }
  0x84   : > { %s923_s11 = smov %s774_s29  ;;  %s924_s12 = smov %s664_s13 }
  0x85   : > { %s925_s13 = smov %s668_s14  ;;  %s926_s14 = smov %s777_s30 }
  0x86   : > { %s927_s15 = smov %s676_s16  ;;  %s928_s16 = smov %s930_s20 }
  0x87   :  { %20 = sbr.rel (!%p18_p2) target bundleno = 12 (0xc), region = 93 }
  0x8c   :  { %311 = vsyncpa [#allocation3], 1 }
  0x8d   :  { %313 = vsyncpa [#allocation3 + $0x1], 1 }
  0x8e   :  { %314 = vsyncpa [#allocation6], 1 }
  0x8f   :  { %316 = vsyncpa [#allocation6 + $0x1], 1 }
  0x90   :  { %317 = vsyncpa [#allocation4], 1 }
  0x91   :  { %319 = vsyncpa [#allocation4 + $0x1], 1 }

</bundles_post_ra>
